<compile_context>
chip_gen: v7x
topology: tpu7x:2x2x1
jax: 0.10.0
libtpu: 0.0.40
codegen_flags: <defaults>
</compile_context>

<pallas_src>
import functools

import jax
import jax.numpy as jnp
from jax.experimental import pallas as pl
from jax.experimental.pallas import tpu as pltpu


# ----------------------------------------------------------------------------
# Pallas kernel: one (batch-block, spatial-tile) step; all channels resident.
# Tiles are (n_blk, C, tm): channels on sublanes, spatial on lanes.
# ----------------------------------------------------------------------------
def _make_attention_block_kernel(n_blk):
    def kernel(g_ref, x_ref,
               wg_ref, bg_ref,
               wx_ref, bx_ref,
               wp_ref, bp_ref,
               out_ref):
        wg = wg_ref[...]                  # (F_int, F_g)   resident
        bg = bg_ref[...]                  # (F_int, 1)
        wx = wx_ref[...]                  # (F_int, F_l)
        bx = bx_ref[...]                  # (F_int, 1)
        wp = wp_ref[...]                  # (1, F_int)
        bp = bp_ref[0, 0]                 # scalar, SMEM

        # Short static unroll over the batch-block dim (n_blk is small).
        for b in range(n_blk):
            g = g_ref[b].astype(jnp.float32)      # (F_g, tm)
            x = x_ref[b].astype(jnp.float32)      # (F_l, tm)

            # 1x1 conv + folded BN -> small channel matmul (MXU) + bias (VPU)
            g1 = jnp.dot(wg, g, preferred_element_type=jnp.float32) + bg
            x1 = jnp.dot(wx, x, preferred_element_type=jnp.float32) + bx
            a = jnp.maximum(g1 + x1, 0.0)          # (F_int, tm) ReLU

            # psi head: F_int -> 1, folded BN, sigmoid.  Clamp keeps exp finite
            # (also protects clipped-edge garbage lanes); exp + approx
            # reciprocal both go to the EUP slot (free under the HBM stream).
            p = jnp.dot(wp, a, preferred_element_type=jnp.float32) + bp
            p = jnp.clip(p, -30.0, 30.0)
            psi = pl.reciprocal(1.0 + jnp.exp(-p), approx=True)   # (1, tm)

            out_ref[b] = (x * psi).astype(out_ref.dtype)   # broadcast over F_l

    return kernel


# ----------------------------------------------------------------------------
# Wrapper: BN folding + layout plumbing (reshape only) + tile sizing + call
# ----------------------------------------------------------------------------
def _fold_bn(w, b, gamma, beta, mean, var, eps=1e-5):
    # BN(conv(x)) = ((W x + b) - mean) * gamma/sqrt(var+eps) + beta
    scale = gamma / jnp.sqrt(var + eps)                      # (C_out,)
    w_eff = (w * scale[:, None]).astype(jnp.float32)         # (C_out, C_in)
    b_eff = ((b - mean) * scale + beta).astype(jnp.float32)  # (C_out,)
    return w_eff, b_eff


def _round_up(v, m):
    return ((v + m - 1) // m) * m


def attention_block_forward(g_nchw, x_nchw, params, *,
                            lane_budget=32768, max_n_blk=16):
    """lane_budget ~= tm * n_blk elements per grid step per stream.

    32768 (~6 MiB of double-buffered VMEM) is safe on v5e/v6e/v7x scoped-VMEM
    defaults and reaches >~90% of HBM roofline on v5e/v6e.  On v7x you may
    raise it to 65536-131072; vmem_limit_bytes is set automatically when the
    estimated working set exceeds the 14 MiB comfort zone.
    """
    N, F_g, H, W = g_nchw.shape
    _, F_l, _, _ = x_nchw.shape
    F_int = params["wg"].shape[0]
    HW = H * W

    # (N, C, H*W): channels on sublanes, spatial on lanes.  Pure reshape,
    # no HBM transpose before or after the kernel.  Inputs keep their dtype
    # (f32 or bf16) -- the kernel widens to f32 internally.
    g_flat = g_nchw.reshape(N, F_g, HW)
    x_flat = x_nchw.reshape(N, F_l, HW)
    out_dtype = x_flat.dtype

    # ---- Tile sizing ---------------------------------------------------
    if HW <= lane_budget:
        # Whole spatial extent in one tile (full-extent block is always legal,
        # even when HW is not a multiple of 128); fold batch to amortize the
        # per-step cost.
        tm = HW
        n_blk = max(1, min(N, lane_budget // max(HW, 1), max_n_blk))
    else:
        # Split HW into ~equal 128-aligned tiles near lane_budget; the ragged
        # last block (if any) is clipped by Pallas (stores masked).
        nb = pl.cdiv(HW, lane_budget)
        tm = _round_up(pl.cdiv(HW, nb), 128)
        n_blk = 1

    grid = (pl.cdiv(N, n_blk), pl.cdiv(HW, tm))

    # ---- Fold BatchNorm into the 1x1 convs ------------------------------
    wg, bg = _fold_bn(params["wg"], params["bg"], params["gamma_g"],
                      params["beta_g"], params["mean_g"], params["var_g"])
    wx, bx = _fold_bn(params["wx"], params["bx"], params["gamma_x"],
                      params["beta_x"], params["mean_x"], params["var_x"])
    wp, bp = _fold_bn(params["wp"], params["bp"], params["gamma_p"],
                      params["beta_p"], params["mean_p"], params["var_p"])
    bg = bg.reshape(F_int, 1)          # broadcast over lanes in-kernel
    bx = bx.reshape(F_int, 1)
    bp = bp.reshape(1, 1)              # scalar bias -> SMEM

    # ---- Cost hint (HBM-bound streaming) --------------------------------
    M = N * HW
    flops = int(M * (2 * F_int * (F_g + F_l + 2) + F_l + 3))
    bytes_accessed = int(M * F_g * g_flat.dtype.itemsize
                         + 2 * M * F_l * x_flat.dtype.itemsize
                         + 4 * (wg.size + wx.size + wp.size + 2 * F_int + 1))
    cost = pl.CostEstimate(flops=flops, transcendentals=int(M),
                           bytes_accessed=bytes_accessed)

    # ---- Compiler params: only raise scoped VMEM when actually needed ----
    # Conservative working-set estimate: 3 streams (g, x, out), 8-sublane
    # padding, f32, double-buffered.
    vmem_est = 2 * 3 * 8 * n_blk * tm * 4 + (1 << 20)
    cp_kwargs = dict(dimension_semantics=("parallel", "parallel"))
    if vmem_est > (14 << 20):
        cp_kwargs["vmem_limit_bytes"] = min(vmem_est + (4 << 20), 48 << 20)

    kernel = _make_attention_block_kernel(n_blk)

    out_flat = pl.pallas_call(
        kernel,
        out_shape=jax.ShapeDtypeStruct((N, F_l, HW), out_dtype),
        grid_spec=pltpu.PrefetchScalarGridSpec(
            num_scalar_prefetch=0,
            grid=grid,
            in_specs=[
                pl.BlockSpec((n_blk, F_g, tm), lambda n, i: (n, 0, i)),  # g
                pl.BlockSpec((n_blk, F_l, tm), lambda n, i: (n, 0, i)),  # x
                pl.BlockSpec((F_int, F_g), lambda n, i: (0, 0)),         # wg
                pl.BlockSpec((F_int, 1),   lambda n, i: (0, 0)),         # bg
                pl.BlockSpec((F_int, F_l), lambda n, i: (0, 0)),         # wx
                pl.BlockSpec((F_int, 1),   lambda n, i: (0, 0)),         # bx
                pl.BlockSpec((1, F_int),   lambda n, i: (0, 0)),         # wp
                pl.BlockSpec(memory_space=pltpu.MemorySpace.SMEM),       # bp
            ],
            out_specs=pl.BlockSpec((n_blk, F_l, tm), lambda n, i: (n, 0, i)),
        ),
        compiler_params=pltpu.CompilerParams(**cp_kwargs),
        cost_estimate=cost,
    )(g_flat, x_flat, wg, bg, wx, bx, wp, bp)

    # (N, F_l, HW) -> NCHW, free reshape.
    return out_flat.reshape(N, F_l, H, W)


# ----------------------------------------------------------------------------
# Pure-JAX reference for correctness check
# ----------------------------------------------------------------------------
def attention_block_ref(g_nchw, x_nchw, params, eps=1e-5):
    def conv1x1(x, w, b):  # x: NCHW, w: (Cout, Cin), b: (Cout,)
        y = jnp.einsum("nchw,oc->nohw", x, w)
        return y + b[None, :, None, None]

    def bn(x, gamma, beta, mean, var):
        return (x - mean[None, :, None, None]) / jnp.sqrt(var + eps)[None, :, None, None] \
               * gamma[None, :, None, None] + beta[None, :, None, None]

    g1 = bn(conv1x1(g_nchw, params["wg"], params["bg"]),
            params["gamma_g"], params["beta_g"], params["mean_g"], params["var_g"])
    x1 = bn(conv1x1(x_nchw, params["wx"], params["bx"]),
            params["gamma_x"], params["beta_x"], params["mean_x"], params["var_x"])
    a = jnp.maximum(g1 + x1, 0.0)
    p = bn(conv1x1(a, params["wp"], params["bp"]),
           params["gamma_p"], params["beta_p"], params["mean_p"], params["var_p"])
    psi = jax.nn.sigmoid(p)
    return x_nchw * psi


# ----------------------------------------------------------------------------
# Deterministic parameter construction + run
# ----------------------------------------------------------------------------
def make_params(key, F_g, F_l, F_int):
    ks = jax.random.split(key, 12)
    return {
        # conv weights stored as (C_out, C_in) -- 1x1 kernels squeezed
        "wg": 0.2 * jax.random.normal(ks[0], (F_int, F_g), jnp.float32),
        "bg": 0.1 * jax.random.normal(ks[1], (F_int,), jnp.float32),
        "wx": 0.2 * jax.random.normal(ks[2], (F_int, F_l), jnp.float32),
        "bx": 0.1 * jax.random.normal(ks[3], (F_int,), jnp.float32),
        "wp": 0.2 * jax.random.normal(ks[4], (1, F_int), jnp.float32),
        "bp": 0.1 * jax.random.normal(ks[5], (1,), jnp.float32),
        # BatchNorm (inference-mode) parameters / running stats
        "gamma_g": 1.0 + 0.1 * jax.random.normal(ks[6], (F_int,), jnp.float32),
        "beta_g":  0.05 * jax.random.normal(ks[7], (F_int,), jnp.float32),
        "mean_g":  0.02 * jax.random.normal(ks[8], (F_int,), jnp.float32),
        "var_g":   1.0 + 0.1 * jax.random.uniform(ks[9], (F_int,), jnp.float32),
        "gamma_x": jnp.ones((F_int,), jnp.float32),
        "beta_x":  jnp.zeros((F_int,), jnp.float32),
        "mean_x":  jnp.zeros((F_int,), jnp.float32),
        "var_x":   jnp.ones((F_int,), jnp.float32),
        "gamma_p": jnp.ones((1,), jnp.float32) * 1.1,
        "beta_p":  jnp.ones((1,), jnp.float32) * 0.02,
        "mean_p":  jnp.zeros((1,), jnp.float32),
        "var_p":   jnp.ones((1,), jnp.float32),
    }


if __name__ == "__main__":
    key = jax.random.PRNGKey(0)
    kg, kx, kp, kg2, kx2 = jax.random.split(key, 5)

    # --- main check: small U-Net-like gate (batch folded into one step) ---
    N, F_g, F_l, F_int, H, W = 2, 4, 4, 8, 16, 16
    g = jax.random.normal(kg, (N, F_g, H, W), jnp.float32)
    x = jax.random.normal(kx, (N, F_l, H, W), jnp.float32)
    params = make_params(kp, F_g, F_l, F_int)

    out = attention_block_forward(g, x, params)
    out = jax.block_until_ready(out)
    ref = attention_block_ref(g, x, params)
    assert out.shape == x.shape
    # Tolerance covers the EUP approx-reciprocal in the sigmoid (~1e-4 rel);
    # structural bugs (folding / bias / layout) produce O(0.1+) errors.
    assert jnp.allclose(out, ref, atol=5e-3, rtol=5e-3), "mismatch vs reference"

    # --- secondary check: non-128-aligned HW + odd batch (full-extent tile,
    # batch-folded block with n_blk = N) -----------------------------------
    N2, H2, W2 = 3, 10, 13
    g2 = jax.random.normal(kg2, (N2, F_g, H2, W2), jnp.float32)
    x2 = jax.random.normal(kx2, (N2, F_l, H2, W2), jnp.float32)
    out2 = jax.block_until_ready(attention_block_forward(g2, x2, params))
    ref2 = attention_block_ref(g2, x2, params)
    assert jnp.allclose(out2, ref2, atol=5e-3, rtol=5e-3), "mismatch (ragged)"

    print("KERNEL_OK")
</pallas_src>

<mosaic_0001>
module attributes {stable_mosaic.version = 11 : i64} {
  func.func @kernel(%arg0: i32, %arg1: i32, %arg2: memref<2x4x256xf32, #tpu.memory_space<vmem>>, %arg3: memref<2x4x256xf32, #tpu.memory_space<vmem>>, %arg4: memref<8x4xf32, #tpu.memory_space<vmem>>, %arg5: memref<8x1xf32, #tpu.memory_space<vmem>>, %arg6: memref<8x4xf32, #tpu.memory_space<vmem>>, %arg7: memref<8x1xf32, #tpu.memory_space<vmem>>, %arg8: memref<1x8xf32, #tpu.memory_space<vmem>>, %arg9: memref<1x1xf32, #tpu.memory_space<smem>>, %arg10: memref<2x4x256xf32, #tpu.memory_space<vmem>>) attributes {dimension_semantics = [#tpu.dimension_semantics<parallel>, #tpu.dimension_semantics<parallel>], iteration_bounds = array<i64: 1, 1>, scalar_prefetch = 0 : i64, scratch_operands = 0 : i64, tpu.core_type = #tpu.core_type<tc>, window_params = [{transform_indices = @transform_0, window_bounds = array<i64: 2, 4, 256>}, {transform_indices = @transform_1, window_bounds = array<i64: 2, 4, 256>}, {pipeline_mode = #tpu.pipeline_mode<synchronous>, transform_indices = @transform_2, window_bounds = array<i64: 8, 4>}, {pipeline_mode = #tpu.pipeline_mode<synchronous>, transform_indices = @transform_3, window_bounds = array<i64: 8, 1>}, {pipeline_mode = #tpu.pipeline_mode<synchronous>, transform_indices = @transform_4, window_bounds = array<i64: 8, 4>}, {pipeline_mode = #tpu.pipeline_mode<synchronous>, transform_indices = @transform_5, window_bounds = array<i64: 8, 1>}, {pipeline_mode = #tpu.pipeline_mode<synchronous>, transform_indices = @transform_6, window_bounds = array<i64: 1, 8>}, {transform_indices = @transform_7, window_bounds = array<i64: 1, 1>}, {transform_indices = @transform_8, window_bounds = array<i64: 2, 4, 256>}]} {
    %c0 = arith.constant 0 : index
    %c0_0 = arith.constant 0 : index
    %0 = vector.load %arg4[%c0, %c0_0] : memref<8x4xf32, #tpu.memory_space<vmem>>, vector<8x4xf32>
    %c0_1 = arith.constant 0 : index
    %c0_2 = arith.constant 0 : index
    %1 = vector.load %arg5[%c0_1, %c0_2] : memref<8x1xf32, #tpu.memory_space<vmem>>, vector<8x1xf32>
    %c0_3 = arith.constant 0 : index
    %c0_4 = arith.constant 0 : index
    %2 = vector.load %arg6[%c0_3, %c0_4] : memref<8x4xf32, #tpu.memory_space<vmem>>, vector<8x4xf32>
    %c0_5 = arith.constant 0 : index
    %c0_6 = arith.constant 0 : index
    %3 = vector.load %arg7[%c0_5, %c0_6] : memref<8x1xf32, #tpu.memory_space<vmem>>, vector<8x1xf32>
    %c0_7 = arith.constant 0 : index
    %c0_8 = arith.constant 0 : index
    %4 = vector.load %arg8[%c0_7, %c0_8] : memref<1x8xf32, #tpu.memory_space<vmem>>, vector<1x8xf32>
    %c0_9 = arith.constant 0 : index
    %c0_10 = arith.constant 0 : index
    %5 = memref.load %arg9[%c0_9, %c0_10] : memref<1x1xf32, #tpu.memory_space<smem>>
    %c0_11 = arith.constant 0 : index
    %c0_12 = arith.constant 0 : index
    %c0_13 = arith.constant 0 : index
    %6 = vector.load %arg2[%c0_11, %c0_12, %c0_13] : memref<2x4x256xf32, #tpu.memory_space<vmem>>, vector<1x4x256xf32>
    %7 = vector.shape_cast %6 : vector<1x4x256xf32> to vector<4x256xf32>
    %c0_14 = arith.constant 0 : index
    %c0_15 = arith.constant 0 : index
    %c0_16 = arith.constant 0 : index
    %8 = vector.load %arg3[%c0_14, %c0_15, %c0_16] : memref<2x4x256xf32, #tpu.memory_space<vmem>>, vector<1x4x256xf32>
    %9 = vector.shape_cast %8 : vector<1x4x256xf32> to vector<4x256xf32>
    %cst = arith.constant dense<0.000000e+00> : vector<8x256xf32>
    %10 = tpu.matmul %0, %7, %cst {dimension_numbers = #tpu.dot_dimension_numbers<[1], [0], [0], [1], [0, 0, 1, 1], [], []>} : vector<8x4xf32>, vector<4x256xf32>, vector<8x256xf32> -> vector<8x256xf32>
    %11 = vector.broadcast %1 : vector<8x1xf32> to vector<8x256xf32>
    %12 = arith.addf %10, %11 : vector<8x256xf32>
    %cst_17 = arith.constant dense<0.000000e+00> : vector<8x256xf32>
    %13 = tpu.matmul %2, %9, %cst_17 {dimension_numbers = #tpu.dot_dimension_numbers<[1], [0], [0], [1], [0, 0, 1, 1], [], []>} : vector<8x4xf32>, vector<4x256xf32>, vector<8x256xf32> -> vector<8x256xf32>
    %14 = vector.broadcast %3 : vector<8x1xf32> to vector<8x256xf32>
    %15 = arith.addf %13, %14 : vector<8x256xf32>
    %16 = arith.addf %12, %15 : vector<8x256xf32>
    %cst_18 = arith.constant 0.000000e+00 : f32
    %17 = vector.broadcast %cst_18 : f32 to vector<8x256xf32>
    %18 = arith.maximumf %16, %17 : vector<8x256xf32>
    %cst_19 = arith.constant dense<0.000000e+00> : vector<1x256xf32>
    %19 = tpu.matmul %4, %18, %cst_19 {dimension_numbers = #tpu.dot_dimension_numbers<[1], [0], [0], [1], [0, 0, 1, 1], [], []>} : vector<1x8xf32>, vector<8x256xf32>, vector<1x256xf32> -> vector<1x256xf32>
    %20 = vector.broadcast %5 : f32 to vector<1x256xf32>
    %21 = arith.addf %19, %20 : vector<1x256xf32>
    %cst_20 = arith.constant -3.000000e+01 : f32
    %cst_21 = arith.constant 3.000000e+01 : f32
    %22 = vector.broadcast %cst_20 : f32 to vector<1x256xf32>
    %23 = arith.maximumf %22, %21 : vector<1x256xf32>
    %24 = vector.broadcast %cst_21 : f32 to vector<1x256xf32>
    %25 = arith.minimumf %24, %23 : vector<1x256xf32>
    %cst_22 = arith.constant 0.000000e+00 : f32
    %26 = vector.broadcast %cst_22 : f32 to vector<1x256xf32>
    %27 = arith.subf %26, %25 : vector<1x256xf32>
    %28 = math.exp %27 : vector<1x256xf32>
    %cst_23 = arith.constant 1.000000e+00 : f32
    %29 = vector.broadcast %cst_23 : f32 to vector<1x256xf32>
    %30 = arith.addf %29, %28 : vector<1x256xf32>
    %31 = tpu.reciprocal %30 {approx = true} : vector<1x256xf32> -> vector<1x256xf32>
    %32 = vector.broadcast %31 : vector<1x256xf32> to vector<4x256xf32>
    %33 = arith.mulf %9, %32 : vector<4x256xf32>
    %c0_24 = arith.constant 0 : index
    %c0_25 = arith.constant 0 : index
    %c0_26 = arith.constant 0 : index
    %34 = vector.load %arg10[%c0_24, %c0_25, %c0_26] : memref<2x4x256xf32, #tpu.memory_space<vmem>>, vector<1x4x256xf32>
    %35 = vector.shape_cast %34 : vector<1x4x256xf32> to vector<4x256xf32>
    %36 = vector.shape_cast %33 : vector<4x256xf32> to vector<1x4x256xf32>
    tpu.vector_store %arg10[%c0_24, %c0_25, %c0_26], %36 {strides = array<i32>} : memref<2x4x256xf32, #tpu.memory_space<vmem>>, vector<1x4x256xf32>,
    %c1 = arith.constant 1 : index
    %c0_27 = arith.constant 0 : index
    %c0_28 = arith.constant 0 : index
    %37 = vector.load %arg2[%c1, %c0_27, %c0_28] : memref<2x4x256xf32, #tpu.memory_space<vmem>>, vector<1x4x256xf32>
    %38 = vector.shape_cast %37 : vector<1x4x256xf32> to vector<4x256xf32>
    %c1_29 = arith.constant 1 : index
    %c0_30 = arith.constant 0 : index
    %c0_31 = arith.constant 0 : index
    %39 = vector.load %arg3[%c1_29, %c0_30, %c0_31] : memref<2x4x256xf32, #tpu.memory_space<vmem>>, vector<1x4x256xf32>
    %40 = vector.shape_cast %39 : vector<1x4x256xf32> to vector<4x256xf32>
    %cst_32 = arith.constant dense<0.000000e+00> : vector<8x256xf32>
    %41 = tpu.matmul %0, %38, %cst_32 {dimension_numbers = #tpu.dot_dimension_numbers<[1], [0], [0], [1], [0, 0, 1, 1], [], []>} : vector<8x4xf32>, vector<4x256xf32>, vector<8x256xf32> -> vector<8x256xf32>
    %42 = vector.broadcast %1 : vector<8x1xf32> to vector<8x256xf32>
    %43 = arith.addf %41, %42 : vector<8x256xf32>
    %cst_33 = arith.constant dense<0.000000e+00> : vector<8x256xf32>
    %44 = tpu.matmul %2, %40, %cst_33 {dimension_numbers = #tpu.dot_dimension_numbers<[1], [0], [0], [1], [0, 0, 1, 1], [], []>} : vector<8x4xf32>, vector<4x256xf32>, vector<8x256xf32> -> vector<8x256xf32>
    %45 = vector.broadcast %3 : vector<8x1xf32> to vector<8x256xf32>
    %46 = arith.addf %44, %45 : vector<8x256xf32>
    %47 = arith.addf %43, %46 : vector<8x256xf32>
    %cst_34 = arith.constant 0.000000e+00 : f32
    %48 = vector.broadcast %cst_34 : f32 to vector<8x256xf32>
    %49 = arith.maximumf %47, %48 : vector<8x256xf32>
    %cst_35 = arith.constant dense<0.000000e+00> : vector<1x256xf32>
    %50 = tpu.matmul %4, %49, %cst_35 {dimension_numbers = #tpu.dot_dimension_numbers<[1], [0], [0], [1], [0, 0, 1, 1], [], []>} : vector<1x8xf32>, vector<8x256xf32>, vector<1x256xf32> -> vector<1x256xf32>
    %51 = vector.broadcast %5 : f32 to vector<1x256xf32>
    %52 = arith.addf %50, %51 : vector<1x256xf32>
    %cst_36 = arith.constant -3.000000e+01 : f32
    %cst_37 = arith.constant 3.000000e+01 : f32
    %53 = vector.broadcast %cst_36 : f32 to vector<1x256xf32>
    %54 = arith.maximumf %53, %52 : vector<1x256xf32>
    %55 = vector.broadcast %cst_37 : f32 to vector<1x256xf32>
    %56 = arith.minimumf %55, %54 : vector<1x256xf32>
    %cst_38 = arith.constant 0.000000e+00 : f32
    %57 = vector.broadcast %cst_38 : f32 to vector<1x256xf32>
    %58 = arith.subf %57, %56 : vector<1x256xf32>
    %59 = math.exp %58 : vector<1x256xf32>
    %cst_39 = arith.constant 1.000000e+00 : f32
    %60 = vector.broadcast %cst_39 : f32 to vector<1x256xf32>
    %61 = arith.addf %60, %59 : vector<1x256xf32>
    %62 = tpu.reciprocal %61 {approx = true} : vector<1x256xf32> -> vector<1x256xf32>
    %63 = vector.broadcast %62 : vector<1x256xf32> to vector<4x256xf32>
    %64 = arith.mulf %40, %63 : vector<4x256xf32>
    %c1_40 = arith.constant 1 : index
    %c0_41 = arith.constant 0 : index
    %c0_42 = arith.constant 0 : index
    %65 = vector.load %arg10[%c1_40, %c0_41, %c0_42] : memref<2x4x256xf32, #tpu.memory_space<vmem>>, vector<1x4x256xf32>
    %66 = vector.shape_cast %65 : vector<1x4x256xf32> to vector<4x256xf32>
    %67 = vector.shape_cast %64 : vector<4x256xf32> to vector<1x4x256xf32>
    tpu.vector_store %arg10[%c1_40, %c0_41, %c0_42], %67 {strides = array<i32>} : memref<2x4x256xf32, #tpu.memory_space<vmem>>, vector<1x4x256xf32>,
    return
  }
  func.func @transform_0(%arg0: i32, %arg1: i32) -> (i32, i32, i32) {
    %c0_i32 = arith.constant 0 : i32
    %c0_i32_0 = arith.constant 0 : i32
    return %arg0, %c0_i32, %arg1 : i32, i32, i32
  }
  func.func @transform_1(%arg0: i32, %arg1: i32) -> (i32, i32, i32) {
    %c0_i32 = arith.constant 0 : i32
    %c0_i32_0 = arith.constant 0 : i32
    return %arg0, %c0_i32, %arg1 : i32, i32, i32
  }
  func.func @transform_2(%arg0: i32, %arg1: i32) -> (i32, i32) {
    %c0_i32 = arith.constant 0 : i32
    %c0_i32_0 = arith.constant 0 : i32
    %c0_i32_1 = arith.constant 0 : i32
    return %c0_i32, %c0_i32_0 : i32, i32
  }
  func.func @transform_3(%arg0: i32, %arg1: i32) -> (i32, i32) {
    %c0_i32 = arith.constant 0 : i32
    %c0_i32_0 = arith.constant 0 : i32
    %c0_i32_1 = arith.constant 0 : i32
    return %c0_i32, %c0_i32_0 : i32, i32
  }
  func.func @transform_4(%arg0: i32, %arg1: i32) -> (i32, i32) {
    %c0_i32 = arith.constant 0 : i32
    %c0_i32_0 = arith.constant 0 : i32
    %c0_i32_1 = arith.constant 0 : i32
    return %c0_i32, %c0_i32_0 : i32, i32
  }
  func.func @transform_5(%arg0: i32, %arg1: i32) -> (i32, i32) {
    %c0_i32 = arith.constant 0 : i32
    %c0_i32_0 = arith.constant 0 : i32
    %c0_i32_1 = arith.constant 0 : i32
    return %c0_i32, %c0_i32_0 : i32, i32
  }
  func.func @transform_6(%arg0: i32, %arg1: i32) -> (i32, i32) {
    %c0_i32 = arith.constant 0 : i32
    %c0_i32_0 = arith.constant 0 : i32
    %c0_i32_1 = arith.constant 0 : i32
    return %c0_i32, %c0_i32_0 : i32, i32
  }
  func.func @transform_7(%arg0: i32, %arg1: i32) -> (i32, i32) {
    %c0_i32 = arith.constant 0 : i32
    %c0_i32_0 = arith.constant 0 : i32
    %c0_i32_1 = arith.constant 0 : i32
    return %c0_i32, %c0_i32_0 : i32, i32
  }
  func.func @transform_8(%arg0: i32, %arg1: i32) -> (i32, i32, i32) {
    %c0_i32 = arith.constant 0 : i32
    %c0_i32_0 = arith.constant 0 : i32
    return %arg0, %c0_i32, %arg1 : i32, i32, i32
  }
}

</mosaic_0001>

<bundles_post_ra>
// kernel: tpu_custom_call.1
= control target key start
LH: loop header
LB: loop body
LE: loop exit
PB: predicated region body
PF: predicated region fallthrough
CT: control target
= control target key end

     0   :  { %vm50_vm0 = vcmask 1043456   ;;  %v679_v3 = vmov 0.0   ;;  %vm46_vm1 = vcmask 31744   ;;  %v680_v7 = vmov 0   ;;  %s797_s0 = inlined_call_operand.vmem [shape: f32[2,4,256], index: 0, kind: input, shape index: {}]   ;;  %s798_s1 = inlined_call_operand.vmem [shape: f32[2,4,256], index: 1, kind: input, shape index: {}]   ;;  %s799_s2 = inlined_call_operand.vmem [shape: f32[8,4], index: 2, kind: input, shape index: {}]   ;;  %s800_s3 = inlined_call_operand.vmem [shape: f32[8,1], index: 3, kind: input, shape index: {}]   ;;  %s801_s4 = inlined_call_operand.vmem [shape: f32[8,4], index: 4, kind: input, shape index: {}]   ;;  %s802_s5 = inlined_call_operand.vmem [shape: f32[8,1], index: 5, kind: input, shape index: {}]   ;;  %s803_s6 = inlined_call_operand.vmem [shape: f32[1,8], index: 6, kind: input, shape index: {}]   ;;  %s804_s7 = inlined_call_operand.<no memory space> [shape: f32[1,1], index: 7, kind: input, shape index: {}]   ;;  %s805_s8 = inlined_call_operand.hbm [shape: f32[2,4,256], index: 8, kind: output, shape index: {}]  }
   0x1   :  { %v37_v0 = vld [vmem:[%s797_s0] sm:$0xff]  ;;  %119 = vmatprep.mubr.f32.mxu0 %v679_v3  ;;  %284 = vmatprep.mubr.f32.mxu1 %v679_v3 }
   0x2   :  { %v735_v1 = vld [vmem:[%s798_s1] sm:$0xff]  ;;  %v45_v2 = vcombine.high %v37_v0, %v37_v0  ;;  %634 = vset.pattern.permute.xlu0 %v680_v7 }
   0x3   :  { %v132_v4 = vcombine.high %v735_v1, %v735_v1  ;;  %v32_v5 = vld [vmem:[%s800_s3] sm:$0xff] }
   0x4   :  { %v31_v6 = vld [vmem:[%s799_s2] sm:$0xff] }
   0x5   :  { %14 = vsyncpa [#allocation4], 0  ;;  %597 = vmatprep.subr.msk.mxu0 %vm50_vm0, %v45_v2  ;;  %41 = vperm.xlu0 %634, %v32_v5   ;;  %v34_v8 = vld [vmem:[%s802_s5] sm:$0xff]  ;;  %v606_v16 = vld [vmem:[%s797_s0 + $0x8] sm:$0xff]  ;;  %vm216_vm2 = vcmask 64512   ;;  %v215_v24 = vstv %s804_s7  ;;  %v305_v45 = vlaneseq }
   0x6   :  { %598 = vmatpush1.msk.msra.mxu0 %vm50_vm0, %v37_v0  ;;  %v33_v9 = vld [vmem:[%s801_s4] sm:$0xff]  ;;  %v764_v18 = vld [vmem:[%s798_s1 + $0x8] sm:$0xff]  ;;  %v324_v20 = vcombine.high %v606_v16, %v606_v16 }
   0x7   :  { %599 = vmatmul.mubr.msk.f32.vlgmr.msra.gmra.mrb[0].mxu0 %vm46_vm1, %v31_v6  ;;  %600 = vmatprep.subr.msk.mxu0 %vm50_vm0, %v132_v4  ;;  %v35_v22 = vld [vmem:[%s803_s6] sm:$0x1]  ;;  %v401_v23 = vcombine.high %v764_v18, %v764_v18  ;;  %v306_v46 = vshrl.u32 %v305_v45, 7  ;;  %s681_s6 = smov [#allocation3]  }
   0x8   :  { %601 = vmatpush1.msk.msra.mxu0 %vm50_vm0, %v735_v1  ;;  %204 = vmatprep.mubr.f32.mxu0 %v679_v3  ;;  %s586_s7 = sshll.u32 %s681_s6, 4  ;;  %s587_s7 = int_to_ptr.vmem [resolvable:$true] %s586_s7 }
   0x9   :  { %128 = vperm.xlu0 %634, %v34_v8   ;;  %v307_v47 = vsub.s32 0, %v306_v46  ;;  %s655_s19 = scalar_lea.vmem %s587_s7, 256  ;;  %p660_p1 = scmp.lt.s32.totalorder %s587_s7, %s587_s7 }
   0xa   :  { %p656_p0 = scmp.ne.s32.totalorder %s587_s7, %s655_s19  ;;  %p661_p2 = scmp.lt.s32.totalorder %s655_s19, %s655_s19 }
   0xc   :  { %p662_p3 = por %p661_p2, %p660_p1 }
   0xe   :  { %p663_p4 = pnand %p662_p3, %p656_p0 }
   0xf   :  { %602 = vmatmul.mubr.msk.f32.vlgmr.msra.gmra.mrb[0].mxu0 %vm46_vm1, %v33_v9 }
  0x10   :  { %545 = vmatprep.mubr.f32.mxu0 %v679_v3 }
  0x84   :  { %v42_v10 = vpop.permute.xlu0 %41 }
  0x88   :  { %v129_v11 = vpop.permute.xlu0 %128 }
  0x89   :  { %v617_v12 = vadd.f32 %v129_v11, %v42_v10 }
  0xe2   :  { %v206_v13 = vpop.f32.mrb[0].mxu0 }
  0xe3   :  { %v618_v14 = vadd.f32 %v617_v12, %v206_v13  ;;  %v208_v15 = vpop.f32.mrb[1].mxu0 }
  0xe4   :  { %v620_v17 = vadd.f32 %v617_v12, %v208_v15 }
  0xe5   :  { %v213_v21 = vmax.f32 %v618_v14, 0.0 }
  0xe6   :  { %v214_v19 = vmax.f32 %v620_v17, 0.0 }
  0xe8   :  { %220 = vmatprep.subr.mxu1 %v214_v19 }
  0xe9   :  { %221 = vmatpush1.msra.mxu1 %v213_v21 }
  0xea   :  { %603 = vmatmul.mubr.msk.f32.vlgmr.msra.gmra.mrb[0].mxu1 %vm216_vm2, %v35_v22  ;;  %608 = vmatprep.subr.msk.mxu1 %vm50_vm0, %v324_v20 }
  0xeb   :  { %609 = vmatpush1.msk.msra.mxu1 %vm50_vm0, %v606_v16  ;;  %393 = vmatprep.mubr.f32.mxu1 %v679_v3 }
  0xec   :  { %611 = vmatprep.subr.msk.mxu1 %vm50_vm0, %v401_v23 }
  0xee   :  { %610 = vmatmul.mubr.msk.f32.vlgmr.msra.gmra.mrb[2].mxu1 %vm46_vm1, %v31_v6 }
  0xef   :  { %612 = vmatpush1.msk.msra.mxu1 %vm50_vm0, %v764_v18  ;;  %470 = vmatprep.mubr.f32.mxu1 %v679_v3 }
  0xf6   :  { %613 = vmatmul.mubr.msk.f32.vlgmr.msra.gmra.mrb[2].mxu1 %vm46_vm1, %v33_v9 }
 0x1bd   :  { %v286_v25 = vpop.f32.mrb[0].mxu1 }
 0x1be   :  { %v287_v26 = vadd.f32 %v286_v25, %v215_v24  ;;  %v288_v27 = vpop.f32.mrb[1].mxu1 }
 0x1bf   :  { %v289_v28 = vadd.f32 %v288_v27, %v215_v24 }
 0x1c0   :  { %v604_v29 = vclamps-f32 %v287_v26, 30.0 }
 0x1c1   :  { %v605_v30 = vclamps-f32 %v289_v28, 30.0 }
 0x1c2   :  { %v295_v31 = vsub.f32 0.0, %v604_v29 }
 0x1c3   :  { %v296_v32 = vsub.f32 0.0, %v605_v30 }
 0x1c4   :  { %v297_v33 = vmul.f32 1.442695, %v295_v31 }
 0x1c5   :  { %v299_v34 = vmul.f32 1.442695, %v296_v32 }
 0x1c6   :  { %639 = vpow2.f32 %v297_v33 }
 0x1c7   :  { %641 = vpow2.f32 %v299_v34 }
 0x1c9   :  { %v472_v35 = vpop.f32.mrb[2].mxu1 }
 0x1ca   :  { %v622_v36 = vadd.f32 %v617_v12, %v472_v35  ;;  %v474_v37 = vpop.f32.mrb[3].mxu1 }
 0x1cb   :  { %v624_v38 = vadd.f32 %v617_v12, %v474_v37 }
 0x1cc   :  { %v479_v40 = vmax.f32 %v622_v36, 0.0 }
 0x1cd   :  { %v480_v39 = vmax.f32 %v624_v38, 0.0 }
 0x1cf   :  { %481 = vmatprep.subr.mxu0 %v480_v39 }
 0x1d0   :  { %v640_v41 = vpop.eup %639  ;;  %482 = vmatpush1.msra.mxu0 %v479_v40 }
 0x1d1   :  { %v642_v42 = vpop.eup %641  ;;  %v301_v43 = vadd.f32 1.0, %v640_v41  ;;  %614 = vmatmul.mubr.msk.f32.vlgmr.msra.gmra.mrb[2].mxu0 %vm216_vm2, %v35_v22 }
 0x1d2   :  { %v302_v44 = vadd.f32 1.0, %v642_v42 }
 0x1d3   :  { %643 = vrcp.f32 %v301_v43 }
 0x1d4   :  { %645 = vrcp.f32 %v302_v44 }
 0x1dd   :  { %v644_v48 = vpop.eup %643 }
 0x1de   :  { %v646_v49 = vpop.eup %645  ;;  %v308_v50 = vrot.slane %v644_v48, %v307_v47 }
 0x1df   :  { %v312_v51 = vrot.slane %v646_v49, %v307_v47 }
 0x1e1   :  { %v315_v52 = vcombine.low %v308_v50, %v312_v51 }
 0x1e3   :  { %v317_v53 = vmul.f32 %v315_v52, %v735_v1 }
 0x1e5   :  { %318 = vst [vmem:[#allocation3] sm:$0xff] %v317_v53 }
 0x2a4   :  { %v547_v54 = vpop.f32.mrb[2].mxu0 }
 0x2a5   :  { %v548_v55 = vadd.f32 %v547_v54, %v215_v24  ;;  %v549_v56 = vpop.f32.mrb[3].mxu0 }
 0x2a6   :  { %v550_v57 = vadd.f32 %v549_v56, %v215_v24 }
 0x2a7   :  { %v615_v58 = vclamps-f32 %v548_v55, 30.0 }
 0x2a8   :  { %v616_v59 = vclamps-f32 %v550_v57, 30.0 }
 0x2a9   :  { %v556_v60 = vsub.f32 0.0, %v615_v58 }
 0x2aa   :  { %v557_v61 = vsub.f32 0.0, %v616_v59 }
 0x2ab   :  { %v558_v62 = vmul.f32 1.442695, %v556_v60 }
 0x2ac   :  { %v560_v63 = vmul.f32 1.442695, %v557_v61 }
 0x2ad   :  { %647 = vpow2.f32 %v558_v62 }
 0x2ae   :  { %649 = vpow2.f32 %v560_v63 }
 0x2b7   :  { %v648_v0 = vpop.eup %647 }
 0x2b8   :  { %v650_v2 = vpop.eup %649  ;;  %v562_v3 = vadd.f32 1.0, %v648_v0 }
 0x2b9   :  { %v563_v4 = vadd.f32 1.0, %v650_v2 }
 0x2ba   :  { %651 = vrcp.f32 %v562_v3 }
 0x2bb   :  { %653 = vrcp.f32 %v563_v4 }
 0x2c4   :  { %v652_v1 = vpop.eup %651 }
 0x2c5   :  { %v654_v5 = vpop.eup %653  ;;  %v569_v6 = vrot.slane %v652_v1, %v307_v47 }
 0x2c6   :  { %v573_v7 = vrot.slane %v654_v5, %v307_v47 }
 0x2c8   :  { %v576_v8 = vcombine.low %v569_v6, %v573_v7 }
 0x2ca   :  { %v578_v9 = vmul.f32 %v764_v18, %v576_v8 }
 0x2cc   :  { %580 = vst [vmem:[#allocation3 + $0x8] sm:$0xff] %v578_v9 }
 0x2cd   :  { %666 = shalt.err (!%p663_p4)
}
 0x2ce   :  { %s667_s22 = scalar_lea.hbm %s805_s8, 256 }
 0x2cf   :  { %p668_p5 = scmp.ne.s32.totalorder %s805_s8, %s667_s22  ;;  %p671_p6 = scmp.lt.u32.totalorder %s667_s22, %s805_s8 }
 0x2d1   :  { %p673_p7 = pnand %p671_p6, %p668_p5 }
 0x2d3   :  { %676 = shalt.err (!%p673_p7)
}
 0x2d4   :  { %s682_s27 = smov 128   ;;  %s683_s28 = smov 8  }
 0x2d5   :  { %592 = dma.vmem_to_hbm [thread:$0]  %s587_s7, 256, %s805_s8, [#allocation4], %s682_s27, %s682_s27, %s683_s28  }
 0x2d6   :  { %677 = dma.done.wait [#allocation4], 256  }
 0x2d7   :  { %678 = vsyncadd [#allocation4], 4294967040 }
 0x2d8   :  { %596 = vsyncpa [#allocation4], 1 }

</bundles_post_ra>
